<compile_context>
chip_gen: v7x
topology: tpu7x:2x2x1
jax: 0.10.0
libtpu: 0.0.40
codegen_flags: <defaults>
</compile_context>

<pallas_src>
import functools

import jax
import jax.numpy as jnp
import numpy as np
from jax.experimental import pallas as pl
from jax.experimental.pallas import tpu as pltpu


def _rpn_head_kernel(x_ref, w3_ref, mask_ref, scale_ref, bias_ref,
                     wh_ref, bh_ref, cls_ref, reg_ref, *, width):
    """One batch element per grid step (channel-major layout).

    x_ref    : (1, C, (H+2)*W + 2) bf16  flat feature, zero-padded by one row
               above/below plus one extra element at each end so every 3x3 tap
               is a contiguous lane-offset window of length H*W.
    w3_ref   : (C, 9C) bf16   3x3 conv weight, [c_out, (dy*3+dx)*C + c_in]
    mask_ref : (2, H*W) bf16  row 0: (col > 0) mask, row 1: (col < W-1) mask
    scale/bias: (C, 1) f32    conv-bias + BatchNorm folded into scale / bias
    wh_ref   : (5A, C) f32    fused [classifier ; regressor] 1x1 weights
    bh_ref   : (5A, 1) f32    fused biases
    outputs  : (1, A, H*W) f32 sigmoid logits, (1, 4A, H*W) f32 regressions
    """
    A = cls_ref.shape[1]
    HW = cls_ref.shape[2]

    x = x_ref[0]                       # (C, Lpad) bf16
    mask_l = mask_ref[0:1, :]          # (1, HW)
    mask_r = mask_ref[1:2, :]

    # im2col: nine lane-offset windows of the flat buffer; the column
    # wrap-around at the left/right image border is zeroed by the masks.
    patches = []
    for dy in range(3):
        for dx in range(3):
            start = dy * width + dx
            p = x[:, start:start + HW]             # (C, HW) contiguous window
            if dx == 0:
                p = p * mask_l
            elif dx == 2:
                p = p * mask_r
            patches.append(p)
    col = jnp.concatenate(patches, axis=0)         # (9C, HW) bf16

    # 3x3 'same' conv as a single MXU matmul: K = 9C, N = H*W (lane-dense).
    y = jnp.dot(w3_ref[...], col, preferred_element_type=jnp.float32)   # (C, HW)
    # conv bias + BatchNorm (inference running stats) folded, then ReLU.
    y = jnp.maximum(y * scale_ref[...] + bias_ref[...], 0.0)

    # Fused 1x1 classifier + regressor heads: (5A, C) @ (C, HW).
    h = jnp.dot(wh_ref[...], y, preferred_element_type=jnp.float32) + bh_ref[...]
    cls_ref[0] = jax.nn.sigmoid(h[:A, :])
    reg_ref[0] = h[A:, :]


def forward_single(feature_nchw, kp):
    """RPNHead.forward_single for one FPN level. Input/output NCHW."""
    N, C, H, W = feature_nchw.shape
    A = kp["num_anchors"]
    HW = H * W
    Lpad = (H + 2) * W + 2   # one zero row above/below + one extra elem each end

    # Single fused XLA pass: flatten spatial, zero-pad along H, cast to bf16.
    x_flat = feature_nchw.reshape(N, C, HW)
    x_pad = jnp.pad(x_flat, ((0, 0), (0, 0), (W + 1, W + 1))).astype(jnp.bfloat16)

    # Column-boundary masks for the dx=-1 / dx=+1 taps.
    col = jnp.arange(HW, dtype=jnp.int32) % W
    masks = jnp.stack([col > 0, col < W - 1]).astype(jnp.bfloat16)     # (2, HW)

    kernel = functools.partial(_rpn_head_kernel, width=W)
    cls_flat, reg_flat = pl.pallas_call(
        kernel,
        out_shape=(jax.ShapeDtypeStruct((N, A, HW), jnp.float32),
                   jax.ShapeDtypeStruct((N, 4 * A, HW), jnp.float32)),
        grid=(N,),
        in_specs=[
            pl.BlockSpec((1, C, Lpad), lambda n: (n, 0, 0)),
            pl.BlockSpec((C, 9 * C), lambda n: (0, 0)),
            pl.BlockSpec((2, HW), lambda n: (0, 0)),
            pl.BlockSpec((C, 1), lambda n: (0, 0)),
            pl.BlockSpec((C, 1), lambda n: (0, 0)),
            pl.BlockSpec((5 * A, C), lambda n: (0, 0)),
            pl.BlockSpec((5 * A, 1), lambda n: (0, 0)),
        ],
        out_specs=(pl.BlockSpec((1, A, HW), lambda n: (n, 0, 0)),
                   pl.BlockSpec((1, 4 * A, HW), lambda n: (n, 0, 0))),
        compiler_params=pltpu.CompilerParams(dimension_semantics=("parallel",)),
    )(x_pad, kp["w3cm"], masks, kp["scale"], kp["bias"],
      kp["w_heads"], kp["b_heads"])

    # Channel-major outputs are already NCHW: just un-flatten the spatial axis.
    return (cls_flat.reshape(N, A, H, W), reg_flat.reshape(N, 4 * A, H, W))


def rpn_head_forward(fpn_features_nchw, kp):
    """RPNHead.forward: apply the shared head to every FPN level."""
    logits, bbox_regs = [], []
    for feat in fpn_features_nchw:
        logit, reg = forward_single(feat, kp)
        logits.append(logit)
        bbox_regs.append(reg)
    return logits, bbox_regs


def forward_single_ref(feature_nchw, kp):
    """Pure-JAX (lax.conv / einsum) reference using the same prepared weights."""
    C = kp["scale"].shape[0]
    A = kp["num_anchors"]
    x = feature_nchw.astype(jnp.bfloat16).astype(jnp.float32)
    w3 = kp["w3_hwio"].astype(jnp.float32)
    y = jax.lax.conv_general_dilated(
        x, w3, window_strides=(1, 1), padding="SAME",
        dimension_numbers=("NCHW", "HWIO", "NCHW"),
        precision=jax.lax.Precision.HIGHEST)
    y = jnp.maximum(y * kp["scale"].reshape(1, C, 1, 1)
                    + kp["bias"].reshape(1, C, 1, 1), 0.0)
    h = jnp.einsum("ac,nchw->nahw", kp["w_heads"], y,
                   precision=jax.lax.Precision.HIGHEST)
    h = h + kp["b_heads"].reshape(1, 5 * A, 1, 1)
    return jax.nn.sigmoid(h[:, :A]), h[:, A:]


def init_params(key, in_channels, num_anchors):
    """Deterministic synthetic parameters (shapes match RPNHead.__init__)."""
    C, A = in_channels, num_anchors
    ks = jax.random.split(key, 8)
    return {
        "w3": 0.05 * jax.random.normal(ks[0], (3, 3, C, C), jnp.float32),  # Conv2d(C,C,3) HWIO
        "b3": 0.05 * jax.random.normal(ks[1], (C,), jnp.float32),
        "gamma": 1.0 + 0.1 * jax.random.normal(ks[2], (C,), jnp.float32),  # BatchNorm2d(C)
        "beta": 0.1 * jax.random.normal(ks[3], (C,), jnp.float32),
        "running_mean": 0.1 * jax.random.normal(ks[4], (C,), jnp.float32),
        "running_var": 1.0 + 0.1 * jax.random.uniform(ks[5], (C,), jnp.float32),
        "w_cls": 0.05 * jax.random.normal(ks[6], (C, A), jnp.float32),     # Conv2d(C,A,1)
        "b_cls": jnp.zeros((A,), jnp.float32),
        "w_reg": 0.05 * jax.random.normal(ks[7], (C, 4 * A), jnp.float32),  # Conv2d(C,4A,1)
        "b_reg": jnp.zeros((4 * A,), jnp.float32),
    }


def prepare_params(raw, eps=1e-5):
    """Fold conv bias into BN, fuse heads, cast conv weight to bf16, go channel-major."""
    C = raw["w3"].shape[2]
    A = raw["w_cls"].shape[1]
    s = raw["gamma"] / jnp.sqrt(raw["running_var"] + eps)
    w3_bf16 = raw["w3"].astype(jnp.bfloat16)                       # (3,3,C,C)
    return {
        "num_anchors": A,
        "w3_hwio": w3_bf16,                                        # for the reference
        "w3cm": jnp.transpose(w3_bf16, (3, 0, 1, 2)).reshape(C, 9 * C),
        "scale": s.reshape(C, 1).astype(jnp.float32),
        "bias": (raw["beta"] + s * (raw["b3"] - raw["running_mean"]))
                .reshape(C, 1).astype(jnp.float32),
        "w_heads": jnp.concatenate([raw["w_cls"], raw["w_reg"]], axis=1)
                   .T.astype(jnp.float32),                          # (5A, C)
        "b_heads": jnp.concatenate([raw["b_cls"], raw["b_reg"]])
                   .reshape(5 * A, 1).astype(jnp.float32),
    }


if __name__ == "__main__":
    key = jax.random.PRNGKey(0)
    N, C, A = 2, 32, 3          # small shapes: batch=2, in_channels=32, num_anchors=3
    pkey, k0, k1, k2 = jax.random.split(key, 4)
    kp = prepare_params(init_params(pkey, C, A))

    # Small stand-ins for the FPN pyramid levels (backbone outputs).
    grid_sizes = [(16, 16), (8, 8), (8, 8)]
    feat_keys = [k0, k1, k2]
    features = [jax.random.normal(fk, (N, C, h, w), jnp.float32)
                for fk, (h, w) in zip(feat_keys, grid_sizes)]

    logits, bbox_regs = rpn_head_forward(features, kp)
    jax.block_until_ready((logits, bbox_regs))

    # Verify against the pure-JAX reference.
    for feat, logit, reg in zip(features, logits, bbox_regs):
        ref_logit, ref_reg = forward_single_ref(feat, kp)
        assert logit.shape == (N, A, feat.shape[2], feat.shape[3])
        assert reg.shape == (N, 4 * A, feat.shape[2], feat.shape[3])
        np.testing.assert_allclose(np.asarray(logit), np.asarray(ref_logit),
                                   atol=1e-4, rtol=1e-4)
        np.testing.assert_allclose(np.asarray(reg), np.asarray(ref_reg),
                                   atol=1e-4, rtol=1e-4)

    print("KERNEL_OK")
</pallas_src>

<mosaic_0001>
module attributes {stable_mosaic.version = 11 : i64} {
  func.func @_rpn_head_kernel(%arg0: i32, %arg1: memref<1x32x290xbf16, #tpu.memory_space<vmem>>, %arg2: memref<32x288xbf16, #tpu.memory_space<vmem>>, %arg3: memref<2x256xbf16, #tpu.memory_space<vmem>>, %arg4: memref<32x1xf32, #tpu.memory_space<vmem>>, %arg5: memref<32x1xf32, #tpu.memory_space<vmem>>, %arg6: memref<15x32xf32, #tpu.memory_space<vmem>>, %arg7: memref<15x1xf32, #tpu.memory_space<vmem>>, %arg8: memref<1x3x256xf32, #tpu.memory_space<vmem>>, %arg9: memref<1x12x256xf32, #tpu.memory_space<vmem>>) attributes {dimension_semantics = [#tpu.dimension_semantics<parallel>], iteration_bounds = array<i64: 2>, scalar_prefetch = 0 : i64, scratch_operands = 0 : i64, tpu.core_type = #tpu.core_type<tc>, window_params = [{transform_indices = @transform_0, window_bounds = array<i64: 1, 32, 290>}, {pipeline_mode = #tpu.pipeline_mode<synchronous>, transform_indices = @transform_1, window_bounds = array<i64: 32, 288>}, {pipeline_mode = #tpu.pipeline_mode<synchronous>, transform_indices = @transform_2, window_bounds = array<i64: 2, 256>}, {pipeline_mode = #tpu.pipeline_mode<synchronous>, transform_indices = @transform_3, window_bounds = array<i64: 32, 1>}, {pipeline_mode = #tpu.pipeline_mode<synchronous>, transform_indices = @transform_4, window_bounds = array<i64: 32, 1>}, {pipeline_mode = #tpu.pipeline_mode<synchronous>, transform_indices = @transform_5, window_bounds = array<i64: 15, 32>}, {pipeline_mode = #tpu.pipeline_mode<synchronous>, transform_indices = @transform_6, window_bounds = array<i64: 15, 1>}, {transform_indices = @transform_7, window_bounds = array<i64: 1, 3, 256>}, {transform_indices = @transform_8, window_bounds = array<i64: 1, 12, 256>}]} {
    %c0 = arith.constant 0 : index
    %c0_0 = arith.constant 0 : index
    %c0_1 = arith.constant 0 : index
    %0 = vector.load %arg1[%c0, %c0_0, %c0_1] : memref<1x32x290xbf16, #tpu.memory_space<vmem>>, vector<1x32x290xbf16>
    %1 = vector.shape_cast %0 : vector<1x32x290xbf16> to vector<32x290xbf16>
    %c0_2 = arith.constant 0 : index
    %c0_3 = arith.constant 0 : index
    %2 = vector.load %arg3[%c0_2, %c0_3] : memref<2x256xbf16, #tpu.memory_space<vmem>>, vector<1x256xbf16>
    %c1 = arith.constant 1 : index
    %c0_4 = arith.constant 0 : index
    %3 = vector.load %arg3[%c1, %c0_4] : memref<2x256xbf16, #tpu.memory_space<vmem>>, vector<1x256xbf16>
    %4 = vector.extract_strided_slice %1 {offsets = [0, 0], sizes = [32, 256], strides = [1, 1]} : vector<32x290xbf16> to vector<32x256xbf16>
    %5 = vector.broadcast %2 : vector<1x256xbf16> to vector<32x256xbf16>
    %6 = arith.mulf %4, %5 : vector<32x256xbf16>
    %7 = vector.extract_strided_slice %1 {offsets = [0, 1], sizes = [32, 256], strides = [1, 1]} : vector<32x290xbf16> to vector<32x256xbf16>
    %8 = vector.extract_strided_slice %1 {offsets = [0, 2], sizes = [32, 256], strides = [1, 1]} : vector<32x290xbf16> to vector<32x256xbf16>
    %9 = vector.broadcast %3 : vector<1x256xbf16> to vector<32x256xbf16>
    %10 = arith.mulf %8, %9 : vector<32x256xbf16>
    %11 = vector.extract_strided_slice %1 {offsets = [0, 16], sizes = [32, 256], strides = [1, 1]} : vector<32x290xbf16> to vector<32x256xbf16>
    %12 = vector.broadcast %2 : vector<1x256xbf16> to vector<32x256xbf16>
    %13 = arith.mulf %11, %12 : vector<32x256xbf16>
    %14 = vector.extract_strided_slice %1 {offsets = [0, 17], sizes = [32, 256], strides = [1, 1]} : vector<32x290xbf16> to vector<32x256xbf16>
    %15 = vector.extract_strided_slice %1 {offsets = [0, 18], sizes = [32, 256], strides = [1, 1]} : vector<32x290xbf16> to vector<32x256xbf16>
    %16 = vector.broadcast %3 : vector<1x256xbf16> to vector<32x256xbf16>
    %17 = arith.mulf %15, %16 : vector<32x256xbf16>
    %18 = vector.extract_strided_slice %1 {offsets = [0, 32], sizes = [32, 256], strides = [1, 1]} : vector<32x290xbf16> to vector<32x256xbf16>
    %19 = vector.broadcast %2 : vector<1x256xbf16> to vector<32x256xbf16>
    %20 = arith.mulf %18, %19 : vector<32x256xbf16>
    %21 = vector.extract_strided_slice %1 {offsets = [0, 33], sizes = [32, 256], strides = [1, 1]} : vector<32x290xbf16> to vector<32x256xbf16>
    %22 = vector.extract_strided_slice %1 {offsets = [0, 34], sizes = [32, 256], strides = [1, 1]} : vector<32x290xbf16> to vector<32x256xbf16>
    %23 = vector.broadcast %3 : vector<1x256xbf16> to vector<32x256xbf16>
    %24 = arith.mulf %22, %23 : vector<32x256xbf16>
    %25 = tpu.concatenate %6, %7, %10, %13, %14, %17, %20, %21, %24 in 0 : vector<32x256xbf16>, vector<32x256xbf16>, vector<32x256xbf16>, vector<32x256xbf16>, vector<32x256xbf16>, vector<32x256xbf16>, vector<32x256xbf16>, vector<32x256xbf16>, vector<32x256xbf16> -> vector<288x256xbf16>
    %c0_5 = arith.constant 0 : index
    %c0_6 = arith.constant 0 : index
    %26 = vector.load %arg2[%c0_5, %c0_6] : memref<32x288xbf16, #tpu.memory_space<vmem>>, vector<32x288xbf16>
    %cst = arith.constant dense<0.000000e+00> : vector<32x256xf32>
    %27 = tpu.matmul %26, %25, %cst {dimension_numbers = #tpu.dot_dimension_numbers<[1], [0], [0], [1], [0, 0, 1, 1], [], []>} : vector<32x288xbf16>, vector<288x256xbf16>, vector<32x256xf32> -> vector<32x256xf32>
    %c0_7 = arith.constant 0 : index
    %c0_8 = arith.constant 0 : index
    %28 = vector.load %arg4[%c0_7, %c0_8] : memref<32x1xf32, #tpu.memory_space<vmem>>, vector<32x1xf32>
    %29 = vector.broadcast %28 : vector<32x1xf32> to vector<32x256xf32>
    %30 = arith.mulf %27, %29 : vector<32x256xf32>
    %c0_9 = arith.constant 0 : index
    %c0_10 = arith.constant 0 : index
    %31 = vector.load %arg5[%c0_9, %c0_10] : memref<32x1xf32, #tpu.memory_space<vmem>>, vector<32x1xf32>
    %32 = vector.broadcast %31 : vector<32x1xf32> to vector<32x256xf32>
    %33 = arith.addf %30, %32 : vector<32x256xf32>
    %cst_11 = arith.constant 0.000000e+00 : f32
    %34 = vector.broadcast %cst_11 : f32 to vector<32x256xf32>
    %35 = arith.maximumf %33, %34 : vector<32x256xf32>
    %c0_12 = arith.constant 0 : index
    %c0_13 = arith.constant 0 : index
    %36 = vector.load %arg6[%c0_12, %c0_13] : memref<15x32xf32, #tpu.memory_space<vmem>>, vector<15x32xf32>
    %cst_14 = arith.constant dense<0.000000e+00> : vector<15x256xf32>
    %37 = tpu.matmul %36, %35, %cst_14 {dimension_numbers = #tpu.dot_dimension_numbers<[1], [0], [0], [1], [0, 0, 1, 1], [], []>} : vector<15x32xf32>, vector<32x256xf32>, vector<15x256xf32> -> vector<15x256xf32>
    %c0_15 = arith.constant 0 : index
    %c0_16 = arith.constant 0 : index
    %38 = vector.load %arg7[%c0_15, %c0_16] : memref<15x1xf32, #tpu.memory_space<vmem>>, vector<15x1xf32>
    %39 = vector.broadcast %38 : vector<15x1xf32> to vector<15x256xf32>
    %40 = arith.addf %37, %39 : vector<15x256xf32>
    %41 = vector.extract_strided_slice %40 {offsets = [0, 0], sizes = [3, 256], strides = [1, 1]} : vector<15x256xf32> to vector<3x256xf32>
    %42 = arith.negf %41 : vector<3x256xf32>
    %43 = math.exp %42 : vector<3x256xf32>
    %cst_17 = arith.constant 1.000000e+00 : f32
    %44 = vector.broadcast %cst_17 : f32 to vector<3x256xf32>
    %45 = arith.addf %44, %43 : vector<3x256xf32>
    %46 = arith.divf %44, %45 : vector<3x256xf32>
    %c0_18 = arith.constant 0 : index
    %c0_19 = arith.constant 0 : index
    %c0_20 = arith.constant 0 : index
    %47 = vector.load %arg8[%c0_18, %c0_19, %c0_20] : memref<1x3x256xf32, #tpu.memory_space<vmem>>, vector<1x3x256xf32>
    %48 = vector.shape_cast %47 : vector<1x3x256xf32> to vector<3x256xf32>
    %49 = vector.shape_cast %46 : vector<3x256xf32> to vector<1x3x256xf32>
    tpu.vector_store %arg8[%c0_18, %c0_19, %c0_20], %49 {strides = array<i32>} : memref<1x3x256xf32, #tpu.memory_space<vmem>>, vector<1x3x256xf32>,
    %50 = vector.extract_strided_slice %40 {offsets = [3, 0], sizes = [12, 256], strides = [1, 1]} : vector<15x256xf32> to vector<12x256xf32>
    %c0_21 = arith.constant 0 : index
    %c0_22 = arith.constant 0 : index
    %c0_23 = arith.constant 0 : index
    %51 = vector.load %arg9[%c0_21, %c0_22, %c0_23] : memref<1x12x256xf32, #tpu.memory_space<vmem>>, vector<1x12x256xf32>
    %52 = vector.shape_cast %51 : vector<1x12x256xf32> to vector<12x256xf32>
    %53 = vector.shape_cast %50 : vector<12x256xf32> to vector<1x12x256xf32>
    tpu.vector_store %arg9[%c0_21, %c0_22, %c0_23], %53 {strides = array<i32>} : memref<1x12x256xf32, #tpu.memory_space<vmem>>, vector<1x12x256xf32>,
    return
  }
  func.func @transform_0(%arg0: i32) -> (i32, i32, i32) {
    %c0_i32 = arith.constant 0 : i32
    %c0_i32_0 = arith.constant 0 : i32
    %c0_i32_1 = arith.constant 0 : i32
    return %arg0, %c0_i32, %c0_i32_0 : i32, i32, i32
  }
  func.func @transform_1(%arg0: i32) -> (i32, i32) {
    %c0_i32 = arith.constant 0 : i32
    %c0_i32_0 = arith.constant 0 : i32
    %c0_i32_1 = arith.constant 0 : i32
    return %c0_i32, %c0_i32_0 : i32, i32
  }
  func.func @transform_2(%arg0: i32) -> (i32, i32) {
    %c0_i32 = arith.constant 0 : i32
    %c0_i32_0 = arith.constant 0 : i32
    %c0_i32_1 = arith.constant 0 : i32
    return %c0_i32, %c0_i32_0 : i32, i32
  }
  func.func @transform_3(%arg0: i32) -> (i32, i32) {
    %c0_i32 = arith.constant 0 : i32
    %c0_i32_0 = arith.constant 0 : i32
    %c0_i32_1 = arith.constant 0 : i32
    return %c0_i32, %c0_i32_0 : i32, i32
  }
  func.func @transform_4(%arg0: i32) -> (i32, i32) {
    %c0_i32 = arith.constant 0 : i32
    %c0_i32_0 = arith.constant 0 : i32
    %c0_i32_1 = arith.constant 0 : i32
    return %c0_i32, %c0_i32_0 : i32, i32
  }
  func.func @transform_5(%arg0: i32) -> (i32, i32) {
    %c0_i32 = arith.constant 0 : i32
    %c0_i32_0 = arith.constant 0 : i32
    %c0_i32_1 = arith.constant 0 : i32
    return %c0_i32, %c0_i32_0 : i32, i32
  }
  func.func @transform_6(%arg0: i32) -> (i32, i32) {
    %c0_i32 = arith.constant 0 : i32
    %c0_i32_0 = arith.constant 0 : i32
    %c0_i32_1 = arith.constant 0 : i32
    return %c0_i32, %c0_i32_0 : i32, i32
  }
  func.func @transform_7(%arg0: i32) -> (i32, i32, i32) {
    %c0_i32 = arith.constant 0 : i32
    %c0_i32_0 = arith.constant 0 : i32
    %c0_i32_1 = arith.constant 0 : i32
    return %arg0, %c0_i32, %c0_i32_0 : i32, i32, i32
  }
  func.func @transform_8(%arg0: i32) -> (i32, i32, i32) {
    %c0_i32 = arith.constant 0 : i32
    %c0_i32_0 = arith.constant 0 : i32
    %c0_i32_1 = arith.constant 0 : i32
    return %arg0, %c0_i32, %c0_i32_0 : i32, i32, i32
  }
}

</mosaic_0001>

<bundles_post_ra>
// kernel: tpu_custom_call.1
= control target key start
LH: loop header
LB: loop body
LE: loop exit
PB: predicated region body
PF: predicated region fallthrough
CT: control target
= control target key end

     0   :  { %14 = vsyncpa [#allocation3], 0  ;;  %s1940_s0 = inlined_call_operand.hbm [shape: bf16[2,32,290], index: 0, kind: input, shape index: {}]   ;;  %s1941_s1 = inlined_call_operand.vmem [shape: bf16[32,288], index: 1, kind: input, shape index: {}]   ;;  %s1942_s2 = inlined_call_operand.vmem [shape: bf16[2,256], index: 2, kind: input, shape index: {}]   ;;  %s1943_s3 = inlined_call_operand.vmem [shape: f32[32,1], index: 3, kind: input, shape index: {}]   ;;  %s1944_s4 = inlined_call_operand.vmem [shape: f32[32,1], index: 4, kind: input, shape index: {}]   ;;  %s1945_s5 = inlined_call_operand.vmem [shape: f32[15,32], index: 5, kind: input, shape index: {}]   ;;  %s1946_s6 = inlined_call_operand.vmem [shape: f32[15,1], index: 6, kind: input, shape index: {}]   ;;  %s1947_s7 = inlined_call_operand.vmem [shape: f32[2,3,256], index: 7, kind: output, shape index: {0}]   ;;  %s1948_s8 = inlined_call_operand.vmem [shape: f32[2,12,256], index: 8, kind: output, shape index: {1}]  }
   0x1   :  { %16 = vsyncpa [#allocation3 + $0x1], 0  ;;  %s1588_s27 = smov 0   ;;  %s1590_s28 = smov 0  }
   0x2   :  { %s1592_s29 = smov 0   ;;  %s1594_s30 = smov 0  }
   0x3 LB: > { %s1607_s9 = sadd.s32 4294967295, %s1522_s30   ;;  %s1610_s10 = sadd.s32 1, %s1522_s30   ;;  %s1522_s30 = sphi %s1594_s30, %s1955_s30   ;;  %s1518_s29 = sphi %s1592_s29, %s1954_s29   ;;  %s1514_s28 = sphi %s1590_s28, %s1953_s28   ;;  %s1510_s27 = sphi %s1588_s27, %s1952_s27  }
   0x4   : > { %s26_s11 = ssub.s32 %s1522_s30, %s1610_s10  ;;  %s29_s12 = sadd.s32 1, %s1518_s29 }
   0x5   : > { %p27_p0 = scmp.eq.s32.totalorder %s26_s11, 0  ;;  %p36_p1 = scmp.ne.s32.totalorder %s1518_s29, %s1514_s28 }
   0x6   : > { %p37_p2 = scmp.eq.s32.totalorder %s1522_s30, 0  ;;  %p42_p3 = scmp.ne.s32.totalorder %s1514_s28, %s1510_s27 }
   0x7   : > { %s1620_s13 = scalar_select %p27_p0, %s1518_s29, %s29_s12  }
   0x8   : > { %p38_p4 = por %p37_p2, %p36_p1  ;;  %p43_p5 = scmp.eq.s32.totalorder %s1607_s9, 0 }
   0x9   : > { %p1383_p6 = scmp.lt.s32.totalorder %s1522_s30, 2  ;;  %s262_s15 = sand.u32 1, %s1518_s29  }
   0xa   : > { %p1624_p7 = por %p43_p5, %p42_p3  ;;  %s1374_s16 = smul.u32 48, %s262_s15 }
   0xb   : > { %s1375_s17 = smul.u32 768, %s1522_s30  ;;  %p1630_p8 = pnand %p1383_p6, %p38_p4 }
   0xc   : > { %s266_s22 = scalar_lea.vmem [#allocation2], %s1374_s16  ;;  %s1642_s24 = scalar_lea.sflag [#allocation3], %s262_s15 }
   0xd   : > { %s1637_s21 = scalar_lea.hbm %s1940_s0, %s1375_s17  ;;  %s273_s23 = sshll.u32 %s266_s22, 4  ;;  %s1639_s23 = int_to_ptr.vmem [resolvable:$true] %s273_s23 }
   0xe   : > { %s1458_s25 = scalar_lea.hbm %s1637_s21, 768  ;;  %p1460_p11 = pneg %p1630_p8 }
   0xf   : > { %p1459_p10 = scmp.ne.s32.totalorder %s1637_s21, %s1458_s25  ;;  %s1463_s11 = scalar_lea.hbm %s1940_s0, 1536 }
  0x10   : > { %p1464_p0 = scmp.lt.u32.totalorder %s1637_s21, %s1940_s0  ;;  %p1465_p1 = scmp.lt.u32.totalorder %s1463_s11, %s1458_s25 }
  0x11   : > { %p1461_p12 = pnand %p1460_p11, %p1459_p10  ;;  %p1467_p3 = scmp.lt.u32.totalorder %s1458_s25, %s1637_s21 }
  0x12   : > { %p1466_p2 = por %p1465_p1, %p1464_p0 }
  0x13   : > { %p1462_p13 = pneg %p1461_p12 }
  0x14   : > { %p1468_p4 = por %p1467_p3, %p1466_p2 }
  0x16   : > { %p1469_p5 = pnand %p1468_p4, %p1462_p13 }
  0x18   : > { %1472 = shalt.err (!%p1469_p5)
}
  0x19   : > { %s1473_s15 = scalar_lea.vmem %s1639_s23, 768  ;;  %s1524_s17 = smov [#allocation2]  }
  0x1a   : > { %p1474_p6 = scmp.ne.s32.totalorder %s1639_s23, %s1473_s15  ;;  %s1478_s19 = sshll.u32 %s1524_s17, 4  ;;  %s1479_s19 = int_to_ptr.vmem [resolvable:$false] %s1478_s19 }
  0x1b   : > { %s1480_s20 = scalar_lea.vmem %s1479_s19, 1536  ;;  %p1481_p9 = scmp.lt.s32.totalorder %s1639_s23, %s1479_s19 }
  0x1c   : > { %p1476_p10 = pnand %p1474_p6, %p1460_p11  ;;  %p1482_p0 = scmp.lt.s32.totalorder %s1480_s20, %s1473_s15 }
  0x1e   : > { %p1477_p12 = pneg %p1476_p10  ;;  %p1483_p1 = por %p1482_p0, %p1481_p9 }
  0x20   : > { %p1484_p2 = pnand %p1483_p1, %p1477_p12 }
  0x22   : > { %1487 = shalt.err (!%p1484_p2)
}
  0x23   : > { %s1525_s22 = smov 192   ;;  %s1526_s25 = smov 12  }
  0x24   : > { %1382 = dma.hbm_to_vmem [thread:$0]  (!%p1630_p8), %s1637_s21, 768, %s1639_s23, %s1642_s24, %s1525_s22, %s1525_s22, %s1526_s25  }
  0x25   : > { %p281_p11 = scmp.lt.s32.totalorder %s1522_s30, 3  ;;  %p1951_p13 = scmp.ge.s32.totalorder %s1522_s30, 1 }
  0x27   : > { %p282_p3 = pnand %p1951_p13, %p281_p11 }
  0x28   : > { %s287_s26 = sand.u32 (!%p282_p3), 1, %s1514_s28  }
  0x29   : > { %285 = sbr.rel (%p282_p3) target bundleno = 860 (0x35c), region = 48  ;;  %s288_s11 = scalar_lea.sflag (!%p282_p3), [#allocation3], %s287_s26 }
  0x2a   : > { %s1376_s27 = smul.u32 (!%p282_p3), 48, %s287_s26 }
  0x2c   : > { %s1674_s12 = scalar_lea.vmem (!%p282_p3), [#allocation2], %s1376_s27 }
  0x30   : > { %1505 = dma.done.wait (%p1624_p7), %s288_s11, 768  }
  0x31   : > { %1507 = vsyncadd (%p1624_p7), %s288_s11, 4294966528  ;;  %v361_v0 = vlaneseq  ;;  %v1527_v1 = vmov 1966171168   ;;  %v1684_v20 = vld [vmem:[%s1674_s12] sm:$0xff]  ;;  %v1687_v21 = vld [vmem:[%s1674_s12 + $0xc] sm:$0xff]  ;;  %s1528_s14 = smov 32  }
  0x32   : > { %v359_v2 = vunpack.c.l.s4 %v1527_v1  ;;  %v1299_v6 = vld.sshfl [vmem:[%s1942_s2] sm:$0x11 pattern:$0x75316420]  ;;  %v1691_v24 = vcombine.high %v1684_v20, %v1687_v21  ;;  %v1694_v25 = vld [vmem:[%s1674_s12 + $0x18] sm:$0xff]  ;;  %v1697_v27 = vld [vmem:[%s1674_s12 + $0x24] sm:$0xff]  ;;  %v1712_v37 = vcombine.low %v1684_v20, %v1687_v21 }
  0x33   : > { %v362_v3 = vshrl.u32 %v361_v0, 7  ;;  %v357_v7 = vcombine.high %v1299_v6, %v1299_v6  ;;  %s1529_s21 = smov 2   ;;  %v1704_v34 = vld [vmem:[%s1674_s12 + $0x8] sm:$0xf]  ;;  %v1707_v35 = vld [vmem:[%s1674_s12 + $0x14] sm:$0xf]  ;;  %v1728_v42 = vcombine.high %v1694_v25, %v1697_v27  ;;  %v1737_v44 = vcombine.low %v1694_v25, %v1697_v27 }
  0x34   : > { %v360_v4 = vunpack.c.0.s8 %v359_v2  ;;  %s1530_s23 = smov 127   ;;  %s1531_s24 = smov 16   ;;  %v1716_v39 = vcombine.low %v1704_v34, %v1707_v35  ;;  %v1720_v40 = vld [vmem:[%s1674_s12 + $0x20] sm:$0xf]  ;;  %v1723_v41 = vld [vmem:[%s1674_s12 + $0x2c] sm:$0xf] }
  0x35   : > { %v377_v11 = vsub.s32 0, %v362_v3  ;;  %s1532_s16 = smov 18   ;;  %v1732_v43 = vcombine.low %v1720_v40, %v1723_v41  ;;  %s1533_s15 = smov 111   ;;  %vm433_vm0 = vcmask 130048   ;;  %vm548_vm1 = vcmask 1039360  }
  0x36   : > { %v363_v5 = vsub.s32 %v360_v4, %v362_v3  ;;  %s1534_s17 = smov 34   ;;  %s1535_s19 = smov 112   ;;  %vm418_vm2 = vcmask 15360   ;;  %vm463_vm3 = vcmask 261120   ;;  %vm448_vm4 = vcmask 146432  }
  0x37   : > { %s1536_s20 = smov 126   ;;  %s1537_s22 = smov 110   ;;  %vm478_vm5 = vcmask 277504   ;;  %vm595_vm6 = vcmask 1031168   ;;  %vm642_vm7 = vcmask 916480   ;;  %vm663_vm8 = vcmask 908288  }
  0x38   : > { %v364_v8 = vrot.slane %v1299_v6, %v363_v5  ;;  %v371_v9 = vrot.slane %v357_v7, %v363_v5  ;;  %s1538_s25 = smov 96   ;;  %s1539_s26 = smov 95   ;;  %vm710_vm9 = vcmask 900096   ;;  %vm757_vm10 = vcmask 785408  }
  0x39   : > { %s1540_s27 = smov 94   ;;  %vm825_vm11 = vcmask 769024   ;;  %vm778_vm12 = vcmask 777216   ;;  %p329_p7 = scmp.lt.s32.totalorder %s1607_s9, 1  ;;  %vm1175_vm13 = vcmask 1044480  }
  0x3a   : > { %v373_v10 = vpack.i.b16 %v364_v8, %v364_v8  ;;  %v396_v12 = vshrl.u32 %v364_v8, 16  ;;  %v403_v15 = vshrl.u32 %v371_v9, 16  ;;  %v380_v16 = vpack.i.b16 %v371_v9, %v371_v9 }
  0x3b   : > { %s1957_s9 = smov (!%p329_p7, %s1607_s9), 1 }
  0x3c   : > { %v378_v13 = vrot.slane %v373_v10, %v377_v11  ;;  %v397_v14 = vpack.i.b16 %v396_v12, %v396_v12  ;;  %v404_v18 = vpack.i.b16 %v403_v15, %v403_v15  ;;  %v385_v19 = vrot.slane %v380_v16, %v377_v11  ;;  %s1357_s30 = sshll.u32 %s1957_s9, 5 }
  0x3e   : > { %v402_v17 = vrot.slane %v397_v14, %v377_v11  ;;  %v409_v22 = vrot.slane %v404_v18, %v377_v11  ;;  %v1300_v23 = vcombine.low %v378_v13, %v385_v19 }
  0x40   : > { %v1301_v26 = vcombine.low %v402_v17, %v409_v22  ;;  %460 = vrot.lane.b32.xlu1 %v1300_v23, %s1528_s14  ;;  %v392_v28 = vmul.bf16 %v1300_v23, %v1684_v20  ;;  %v393_v29 = vmul.bf16 %v1300_v23, %v1687_v21  ;;  %v394_v30 = vmul.bf16 %v1300_v23, %v1694_v25 }
  0x41   : > { %v395_v31 = vmul.bf16 %v1300_v23, %v1697_v27 }
  0x42   : > { %415 = vrot.lane.b32.xlu0 %v1301_v26, %s1529_s21  ;;  %v1303_v32 = vcombine.high %v392_v28, %v393_v29  ;;  %v1302_v33 = vcombine.low %v392_v28, %v393_v29  ;;  %s338_s21 = scalar_lea.vmem %s1948_s8, %s1357_s30 }
  0x43   : > { %v1305_v36 = vcombine.high %v394_v30, %v395_v31  ;;  %v1304_v38 = vcombine.low %v394_v30, %v395_v31 }
  0x44   : > { %538 = vrot.lane.b32.xlu1 %v1691_v24, %s1530_s23  ;;  %879 = vmatprep.subr.bf16.mxu0 %v1303_v32 }
  0x45   : > { %880 = vmatpush1.bf16.msra.mxu0 %v1302_v33 }
  0x46   : > { %430 = vrot.lane.b32.xlu0 %v1300_v23, %s1531_s24  ;;  %881 = vmatprep.subr.bf16.mxu0 %v1305_v36 }
  0x48   : > { %536 = vrot.lane.b32.xlu1 %v1712_v37, %s1530_s23 }
  0x49   : > { %882 = vmatpush1.bf16.msra.mxu0 %v1304_v38 }
  0x4a   : > { %540 = vrot.lane.b32.xlu0 %v1716_v39, %s1530_s23 }
  0x4c   : > { %445 = vrot.lane.b32.xlu1 %v1301_v26, %s1532_s16 }
  0x4e   : > { %544 = vrot.lane.b32.xlu0 %v1728_v42, %s1530_s23 }
  0x50   : > { %546 = vrot.lane.b32.xlu1 %v1732_v43, %s1530_s23 }
  0x52   : > { %542 = vrot.lane.b32.xlu0 %v1737_v44, %s1530_s23  ;;  %s1356_s23 = sshll.u32 %s1957_s9, 3 }
  0x54   : > { %653 = vrot.lane.b32.xlu1 %v1691_v24, %s1533_s15 }
  0x56   : > { %475 = vrot.lane.b32.xlu0 %v1301_v26, %s1534_s17 }
  0x58   : > { %651 = vrot.lane.b32.xlu1 %v1712_v37, %s1533_s15 }
  0x5a   : > { %655 = vrot.lane.b32.xlu0 %v1716_v39, %s1533_s15 }
  0x5c   : > { %661 = vrot.lane.b32.xlu1 %v1732_v43, %s1533_s15 }
  0x5e   : > { %659 = vrot.lane.b32.xlu0 %v1728_v42, %s1533_s15 }
  0x62   : > { %657 = vrot.lane.b32.xlu0 %v1737_v44, %s1533_s15  ;;  %s333_s15 = scalar_lea.vmem %s1947_s7, %s1356_s23 }
  0xb2   : > { %v1747_v45 = vpop.permute.xlu1 %460 }
  0xb3   : > { %v462_v26 = vrot.slane %v1747_v45, 4 }
  0xb4   : > { %v416_v46 = vpop.permute.xlu0 %415 }
  0xb5   : > { %v417_v2 = vrot.slane %v416_v46, 4  ;;  %v468_v32 = vmul.bf16 %v462_v26, %v1704_v34  ;;  %v470_v33 = vmul.bf16 %v462_v26, %v1707_v35 }
  0xb6   : > { %v539_v47 = vpop.permute.xlu1 %538 }
  0xb7   : > { %v423_v8 = vmul.bf16 %v417_v2, %v1704_v34  ;;  %v425_v12 = vmul.bf16 %v417_v2, %v1707_v35  ;;  %v427_v14 = vmul.bf16 %v417_v2, %v1720_v40  ;;  %v429_v16 = vmul.bf16 %v417_v2, %v1723_v41 }
  0xb8   : > { %v431_v48 = vpop.permute.xlu0 %430  ;;  %v419_v30 = vsel %vm418_vm2, %v417_v2, %v416_v46  ;;  %v1332_v46 = vcombine.low %v468_v32, %v470_v33 }
  0xb9   : > { %v432_v49 = vrot.slane %v431_v48, 4  ;;  %v1314_v19 = vcombine.low %v423_v8, %v425_v12  ;;  %v1317_v28 = vcombine.low %v427_v14, %v429_v16  ;;  %v422_v36 = vmul.bf16 %v419_v30, %v1684_v20  ;;  %v1444_v16 = vld [vmem:[%s1941_s1 + $0x4] ss:$12 sps:$4 sm:$0xff]  }
  0xba   : > { %v537_v50 = vpop.permute.xlu1 %536  ;;  %v424_v38 = vmul.bf16 %v419_v30, %v1687_v21  ;;  %911 = vmatprep.mubr.bf16.mxu0 %v1444_v16 }
  0xbb   : > { %v434_v51 = vsel %vm433_vm0, %v432_v49, %v431_v48  ;;  %v438_v52 = vmul.bf16 %v432_v49, %v1704_v34  ;;  %v440_v53 = vmul.bf16 %v432_v49, %v1707_v35  ;;  %v442_v54 = vmul.bf16 %v432_v49, %v1720_v40 }
  0xbc   : > { %v441_v55 = vmul.bf16 %v434_v51, %v1694_v25  ;;  %v443_v56 = vmul.bf16 %v434_v51, %v1697_v27  ;;  %v541_v57 = vpop.permute.xlu0 %540  ;;  %v444_v59 = vmul.bf16 %v432_v49, %v1723_v41  ;;  %v549_v61 = vsel %vm548_vm1, %v537_v50, %v539_v47 }
  0xbd   : > { %v1320_v58 = vcombine.low %v438_v52, %v440_v53  ;;  %v550_v60 = vsel %vm548_vm1, %v539_v47, %v541_v57  ;;  %v437_v63 = vmul.bf16 %v434_v51, %v1684_v20  ;;  %v439_v0 = vmul.bf16 %v434_v51, %v1687_v21 }
  0xbe   : > { %883 = vmatprep.subr.bf16.mxu0 %v550_v60  ;;  %v1757_v62 = vpop.permute.xlu1 %445  ;;  %v1323_v1 = vcombine.low %v442_v54, %v444_v59  ;;  %v1322_v4 = vcombine.high %v441_v55, %v443_v56  ;;  %v1321_v11 = vcombine.low %v441_v55, %v443_v56  ;;  %v426_v47 = vmul.bf16 %v419_v30, %v1694_v25 }
  0xbf   : > { %634 = vrot.lane.b32.xlu0 %v1320_v58, %s1535_s19  ;;  %884 = vmatpush1.bf16.msra.mxu0 %v549_v61  ;;  %v1319_v6 = vcombine.high %v437_v63, %v439_v0  ;;  %v1764_v10 = vrot.slane %v1757_v62, 4  ;;  %v1318_v15 = vcombine.low %v437_v63, %v439_v0  ;;  %v428_v48 = vmul.bf16 %v419_v30, %v1697_v27 }
  0xc0   : > { %v545_v3 = vpop.permute.xlu0 %544  ;;  %640 = vrot.lane.b32.xlu1 %v1323_v1, %s1535_s19  ;;  %v1313_v49 = vcombine.high %v422_v36, %v424_v38  ;;  %v464_v50 = vsel %vm463_vm3, %v462_v26, %v1747_v45  ;;  %v1312_v54 = vcombine.low %v422_v36, %v424_v38  ;;  %v472_v61 = vmul.bf16 %v462_v26, %v1720_v40 }
  0xc1   : > { %v453_v17 = vmul.bf16 %v1764_v10, %v1704_v34  ;;  %v455_v18 = vmul.bf16 %v1764_v10, %v1707_v35  ;;  %v457_v22 = vmul.bf16 %v1764_v10, %v1720_v40  ;;  %v459_v23 = vmul.bf16 %v1764_v10, %v1723_v41 }
  0xc2   : > { %v547_v5 = vpop.permute.xlu1 %546  ;;  %v1316_v51 = vcombine.high %v426_v47, %v428_v48  ;;  %v467_v52 = vmul.bf16 %v464_v50, %v1684_v20  ;;  %v469_v53 = vmul.bf16 %v464_v50, %v1687_v21  ;;  %v471_v55 = vmul.bf16 %v464_v50, %v1694_v25 }
  0xc3   : > { %638 = vrot.lane.b32.xlu0 %v1322_v4, %s1535_s19  ;;  %v552_v7 = vsel %vm548_vm1, %v545_v3, %v547_v5  ;;  %v1326_v29 = vcombine.low %v453_v17, %v455_v18  ;;  %v1329_v31 = vcombine.low %v457_v22, %v459_v23  ;;  %v473_v56 = vmul.bf16 %v464_v50, %v1697_v27  ;;  %v987_v17 = vld [vmem:[%s1943_s3 + $0x10] sm:$0xff]  ;;  %v1017_v18 = vld [vmem:[%s1944_s4] sm:$0xff]  ;;  %v988_v23 = vld [vmem:[%s1943_s3 + $0x18] sm:$0xff] }
  0xc4   : > { %v543_v9 = vpop.permute.xlu0 %542  ;;  %885 = vmatprep.subr.bf16.mxu0 %v552_v7  ;;  %632 = vrot.lane.b32.xlu1 %v1319_v6, %s1535_s19  ;;  %v1315_v57 = vcombine.low %v426_v47, %v428_v48  ;;  %v1331_v45 = vcombine.high %v467_v52, %v469_v53  ;;  %v1330_v60 = vcombine.low %v467_v52, %v469_v53  ;;  %v1059_v22 = vld [vmem:[%s1946_s6] sm:$0xff] }
  0xc5   : > { %v551_v13 = vsel %vm548_vm1, %v543_v9, %v545_v3  ;;  %v1334_v58 = vcombine.high %v471_v55, %v473_v56  ;;  %v474_v63 = vmul.bf16 %v462_v26, %v1723_v41  ;;  %v1333_v1 = vcombine.low %v471_v55, %v473_v56  ;;  %v1020_v26 = vld [vmem:[%s1944_s4 + $0x18] sm:$0xff] }
  0xc6   : > { %886 = vmatpush1.bf16.msra.mxu0 %v551_v13  ;;  %v449_v5 = vsel %vm448_vm4, %v1764_v10, %v1757_v62  ;;  %v654_v30 = vpop.permute.xlu1 %653 }
  0xc7   : > { %636 = vrot.lane.b32.xlu0 %v1321_v11, %s1535_s19  ;;  %v1335_v2 = vcombine.low %v472_v61, %v474_v63  ;;  %v452_v6 = vmul.bf16 %v449_v5, %v1684_v20  ;;  %v454_v7 = vmul.bf16 %v449_v5, %v1687_v21  ;;  %v456_v9 = vmul.bf16 %v449_v5, %v1694_v25 }
  0xc8   : > { %630 = vrot.lane.b32.xlu1 %v1318_v15, %s1535_s19  ;;  %v476_v59 = vpop.permute.xlu0 %475 }
  0xc9   : > { %v477_v0 = vrot.slane %v476_v59, 4  ;;  %v1324_v10 = vcombine.low %v452_v6, %v454_v7 }
  0xca   : > { %v652_v32 = vpop.permute.xlu1 %651 }
  0xcb   : > { %587 = vrot.lane.b32.xlu0 %v1314_v19, %s1536_s20  ;;  %v483_v3 = vmul.bf16 %v477_v0, %v1704_v34  ;;  %v485_v4 = vmul.bf16 %v477_v0, %v1707_v35  ;;  %v458_v34 = vmul.bf16 %v449_v5, %v1697_v27  ;;  %v1325_v35 = vcombine.high %v452_v6, %v454_v7  ;;  %v1018_v19 = vld [vmem:[%s1944_s4 + $0x8] sm:$0xff] }
  0xcc   : > { %593 = vrot.lane.b32.xlu1 %v1317_v28, %s1536_s20  ;;  %v479_v11 = vsel %vm478_vm5, %v477_v0, %v476_v59  ;;  %v489_v12 = vmul.bf16 %v477_v0, %v1723_v41  ;;  %v1060_v28 = vld [vmem:[%s1946_s6 + $0x8] sm:$0x7f] }
  0xcd   : > { %v1338_v8 = vcombine.low %v483_v3, %v485_v4  ;;  %v1328_v62 = vcombine.high %v456_v9, %v458_v34  ;;  %v482_v13 = vmul.bf16 %v479_v11, %v1684_v20  ;;  %v484_v14 = vmul.bf16 %v479_v11, %v1687_v21 }
  0xce   : > { %v486_v20 = vmul.bf16 %v479_v11, %v1694_v25  ;;  %v488_v21 = vmul.bf16 %v479_v11, %v1697_v27  ;;  %v986_v25 = vld [vmem:[%s1943_s3 + $0x8] sm:$0xff]  ;;  %v985_v27 = vld [vmem:[%s1943_s3] sm:$0xff]  ;;  %v662_v36 = vpop.permute.xlu1 %661 }
  0xcf   : > { %702 = vrot.lane.b32.xlu0 %v1326_v29, %s1537_s22  ;;  %v1336_v41 = vcombine.low %v482_v13, %v484_v14  ;;  %v656_v29 = vpop.permute.xlu0 %655 }
  0xd0   : > { %708 = vrot.lane.b32.xlu1 %v1329_v31, %s1537_s22 }
  0xd3   : > { %749 = vrot.lane.b32.xlu0 %v1332_v46, %s1538_s25  ;;  %v660_v31 = vpop.permute.xlu0 %659 }
  0xd4   : > { %585 = vrot.lane.b32.xlu1 %v1313_v49, %s1536_s20 }
  0xd7   : > { %591 = vrot.lane.b32.xlu0 %v1316_v51, %s1536_s20  ;;  %v658_v33 = vpop.permute.xlu0 %657 }
  0xd8   : > { %583 = vrot.lane.b32.xlu1 %v1312_v54, %s1536_s20 }
  0xdb   : > { %589 = vrot.lane.b32.xlu0 %v1315_v57, %s1536_s20 }
  0xdc   : > { %747 = vrot.lane.b32.xlu1 %v1331_v45, %s1538_s25 }
  0xdf   : > { %753 = vrot.lane.b32.xlu0 %v1334_v58, %s1538_s25 }
  0xe0   : > { %745 = vrot.lane.b32.xlu1 %v1330_v60, %s1538_s25 }
  0xe3   : > { %751 = vrot.lane.b32.xlu0 %v1333_v1, %s1538_s25 }
  0xe4   : > { %755 = vrot.lane.b32.xlu1 %v1335_v2, %s1538_s25 }
  0xe7   : > { %770 = vrot.lane.b32.xlu0 %v1716_v39, %s1539_s26  ;;  %v1327_v39 = vcombine.low %v456_v9, %v458_v34  ;;  %v665_v9 = vsel %vm663_vm8, %v654_v30, %v656_v29 }
  0xe8   : > { %768 = vrot.lane.b32.xlu1 %v1691_v24, %s1539_s26  ;;  %v487_v24 = vmul.bf16 %v477_v0, %v1720_v40  ;;  %v1337_v40 = vcombine.high %v482_v13, %v484_v14 }
  0xea   : > { %v1341_v15 = vcombine.low %v487_v24, %v489_v12  ;;  %v666_v24 = vsel %vm663_vm8, %v658_v33, %v660_v31 }
  0xeb   : > { %817 = vrot.lane.b32.xlu0 %v1338_v8, %s1540_s27 }
  0xec   : > { %700 = vrot.lane.b32.xlu1 %v1325_v35, %s1537_s22 }
  0xef   : > { %706 = vrot.lane.b32.xlu0 %v1328_v62, %s1537_s22  ;;  %v664_v62 = vsel %vm663_vm8, %v652_v32, %v654_v30 }
  0xf0   : > { %698 = vrot.lane.b32.xlu1 %v1324_v10, %s1537_s22  ;;  %v667_v10 = vsel %vm663_vm8, %v660_v31, %v662_v36  ;;  %v1445_v36 = vld [vmem:[%s1941_s1 + $0x8] ss:$12 sps:$4 sm:$0xff]  }
  0xf3   : > { %704 = vrot.lane.b32.xlu0 %v1327_v39, %s1537_s22 }
  0xf4   : > { %766 = vrot.lane.b32.xlu1 %v1712_v37, %s1539_s26  ;;  %v1541_v37 = vmov 0  }
  0xf5   : > { %964 = vmatprep.mubr.bf16.mxu1 %v1541_v37  ;;  %1434 = vset.pattern.permute.xlu1 %v1541_v37 }
  0xf6   : > { %1435 = vset.pattern.permute.xlu0 %v1541_v37 }
  0xf7   : > { %776 = vrot.lane.b32.xlu0 %v1732_v43, %s1539_s26  ;;  %v1339_v43 = vcombine.low %v486_v20, %v488_v21 }
  0xf8   : > { %774 = vrot.lane.b32.xlu1 %v1728_v42, %s1539_s26  ;;  %v1340_v42 = vcombine.high %v486_v20, %v488_v21 }
  0xfb   : > { %823 = vrot.lane.b32.xlu0 %v1341_v15, %s1540_s27 }
  0xfc   : > { %815 = vrot.lane.b32.xlu1 %v1337_v40, %s1540_s27 }
  0xff   : > { %813 = vrot.lane.b32.xlu0 %v1336_v41, %s1540_s27 }
 0x100   : > { %821 = vrot.lane.b32.xlu1 %v1340_v42, %s1540_s27 }
 0x103   : > { %819 = vrot.lane.b32.xlu0 %v1339_v43, %s1540_s27 }
 0x104   : > { %772 = vrot.lane.b32.xlu1 %v1737_v44, %s1539_s26  ;;  %v1019_v44 = vld [vmem:[%s1944_s4 + $0x10] sm:$0xff] }
 0x107   : > { %996 = vperm.xlu0 %1435, %v986_v25  }
 0x108   : > { %991 = vperm.xlu1 %1434, %v985_v27  }
 0x10b   : > { %1001 = vperm.xlu0 %1435, %v987_v17  }
 0x10c   : > { %1023 = vperm.xlu1 %1434, %v1017_v18  }
 0x10f   : > { %1033 = vperm.xlu0 %1435, %v1019_v44  }
 0x110   : > { %1028 = vperm.xlu1 %1434, %v1018_v19  }
 0x113   : > { %1063 = vperm.xlu0 %1435, %v1059_v22  }
 0x114   : > { %1006 = vperm.xlu1 %1434, %v988_v23  }
 0x118   : > { %1038 = vperm.xlu1 %1434, %v1020_v26  }
 0x11c   : > { %1068 = vperm.xlu1 %1434, %v1060_v28  }
 0x131   : > { %v635_v38 = vpop.permute.xlu0 %634 }
 0x132   : > { %v641_v47 = vpop.permute.xlu1 %640 }
 0x135   : > { %v639_v48 = vpop.permute.xlu0 %638 }
 0x136   : > { %v633_v46 = vpop.permute.xlu1 %632  ;;  %v646_v5 = vsel %vm642_vm7, %v639_v48, %v641_v47 }
 0x137   : > { %v644_v1 = vsel %vm642_vm7, %v633_v46, %v635_v38 }
 0x139   : > { %v637_v49 = vpop.permute.xlu0 %636 }
 0x13a   : > { %v631_v50 = vpop.permute.xlu1 %630  ;;  %v645_v8 = vsel %vm642_vm7, %v637_v49, %v639_v48  ;;  %v1442_v48 = vld [vmem:[%s1941_s1] ss:$12 sps:$4 sm:$0xff]  }
 0x13b   : > { %v643_v4 = vsel %vm642_vm7, %v631_v50, %v633_v46  ;;  %v1446_v46 = vld [vmem:[%s1941_s1 + $0x1c] ss:$12 sps:$4 sm:$0xff]   ;;  %v1449_v49 = vld [vmem:[%s1941_s1 + $0x20] ss:$12 sps:$4 sm:$0xff]   ;;  %v1448_v50 = vld [vmem:[%s1941_s1 + $0x18] ss:$12 sps:$4 sm:$0xff]  }
 0x13d   : > { %v588_v51 = vpop.permute.xlu0 %587 }
 0x13e   : > { %v594_v52 = vpop.permute.xlu1 %593 }
 0x141   : > { %v703_v53 = vpop.permute.xlu0 %702 }
 0x142   : > { %v709_v54 = vpop.permute.xlu1 %708 }
 0x145   : > { %v750_v55 = vpop.permute.xlu0 %749 }
 0x146   : > { %v586_v56 = vpop.permute.xlu1 %585 }
 0x147   : > { %v597_v57 = vsel %vm595_vm6, %v586_v56, %v588_v51  ;;  %v1542_v51 = vmov 0.0  }
 0x148   : > { %887 = vmatprep.subr.bf16.mxu0 %v597_v57 }
 0x149   : > { %v592_v45 = vpop.permute.xlu0 %591 }
 0x14a   : > { %v584_v58 = vpop.permute.xlu1 %583  ;;  %v599_v59 = vsel %vm595_vm6, %v592_v45, %v594_v52 }
 0x14b   : > { %v596_v60 = vsel %vm595_vm6, %v584_v58, %v586_v56 }
 0x14c   : > { %888 = vmatpush1.bf16.msra.mxu0 %v596_v60 }
 0x14d   : > { %v590_v61 = vpop.permute.xlu0 %589  ;;  %889 = vmatprep.subr.bf16.mxu0 %v599_v59 }
 0x14e   : > { %v598_v63 = vsel %vm595_vm6, %v590_v61, %v592_v45  ;;  %v748_v0 = vpop.permute.xlu1 %747 }
 0x14f   : > { %v759_v41 = vsel %vm757_vm10, %v748_v0, %v750_v55 }
 0x150   : > { %890 = vmatpush1.bf16.msra.mxu0 %v598_v63 }
 0x151   : > { %v754_v2 = vpop.permute.xlu0 %753  ;;  %891 = vmatprep.subr.bf16.mxu0 %v644_v1 }
 0x152   : > { %v746_v3 = vpop.permute.xlu1 %745 }
 0x153   : > { %v758_v25 = vsel %vm757_vm10, %v746_v3, %v748_v0 }
 0x154   : > { %892 = vmatpush1.bf16.msra.mxu0 %v643_v4 }
 0x155   : > { %v752_v6 = vpop.permute.xlu0 %751  ;;  %893 = vmatprep.subr.bf16.mxu0 %v646_v5 }
 0x156   : > { %v756_v7 = vpop.permute.xlu1 %755  ;;  %v760_v44 = vsel %vm757_vm10, %v752_v6, %v754_v2 }
 0x157   : > { %v761_v27 = vsel %vm757_vm10, %v754_v2, %v756_v7 }
 0x158   : > { %894 = vmatpush1.bf16.msra.mxu0 %v645_v8 }
 0x159   : > { %v771_v34 = vpop.permute.xlu0 %770  ;;  %895 = vmatprep.subr.bf16.mxu0 %v665_v9 }
 0x15a   : > { %v769_v35 = vpop.permute.xlu1 %768 }
 0x15b   : > { %v780_v22 = vsel %vm778_vm12, %v769_v35, %v771_v34 }
 0x15c   : > { %896 = vmatpush1.bf16.msra.mxu0 %v664_v62 }
 0x15d   : > { %v818_v39 = vpop.permute.xlu0 %817  ;;  %897 = vmatprep.subr.bf16.mxu0 %v667_v10 }
 0x15e   : > { %v701_v11 = vpop.permute.xlu1 %700 }
 0x15f   : > { %v712_v12 = vsel %vm710_vm9, %v701_v11, %v703_v53 }
 0x160   : > { %898 = vmatpush1.bf16.msra.mxu0 %v666_v24 }
 0x161   : > { %v707_v13 = vpop.permute.xlu0 %706  ;;  %899 = vmatprep.subr.bf16.mxu0 %v712_v12 }
 0x162   : > { %v699_v14 = vpop.permute.xlu1 %698  ;;  %v714_v15 = vsel %vm710_vm9, %v707_v13, %v709_v54 }
 0x163   : > { %v711_v16 = vsel %vm710_vm9, %v699_v14, %v701_v11 }
 0x164   : > { %900 = vmatpush1.bf16.msra.mxu0 %v711_v16 }
 0x165   : > { %v705_v20 = vpop.permute.xlu0 %704  ;;  %901 = vmatprep.subr.bf16.mxu0 %v714_v15 }
 0x166   : > { %v713_v21 = vsel %vm710_vm9, %v705_v20, %v707_v13  ;;  %v767_v40 = vpop.permute.xlu1 %766 }
 0x167   : > { %v779_v29 = vsel %vm778_vm12, %v767_v40, %v769_v35 }
 0x168   : > { %902 = vmatpush1.bf16.msra.mxu0 %v713_v21 }
 0x169   : > { %v777_v42 = vpop.permute.xlu0 %776  ;;  %903 = vmatprep.subr.bf16.mxu0 %v759_v41 }
 0x16a   : > { %v775_v43 = vpop.permute.xlu1 %774 }
 0x16b   : > { %v782_v31 = vsel %vm778_vm12, %v775_v43, %v777_v42 }
 0x16c   : > { %904 = vmatpush1.bf16.msra.mxu0 %v758_v25 }
 0x16d   : > { %v824_v17 = vpop.permute.xlu0 %823  ;;  %905 = vmatprep.subr.bf16.mxu0 %v761_v27 }
 0x16e   : > { %v816_v18 = vpop.permute.xlu1 %815 }
 0x16f   : > { %v827_v19 = vsel %vm825_vm11, %v816_v18, %v818_v39 }
 0x170   : > { %906 = vmatpush1.bf16.msra.mxu0 %v760_v44  ;;  %932 = vmatprep.subr.bf16.mxu1 %v827_v19 }
 0x171   : > { %v814_v23 = vpop.permute.xlu0 %813  ;;  %907 = vmatprep.subr.bf16.mxu0 %v780_v22 }
 0x172   : > { %v826_v26 = vsel %vm825_vm11, %v814_v23, %v816_v18  ;;  %v822_v28 = vpop.permute.xlu1 %821 }
 0x173   : > { %933 = vmatpush1.bf16.msra.mxu1 %v826_v26  ;;  %v829_v30 = vsel %vm825_vm11, %v822_v28, %v824_v17 }
 0x174   : > { %908 = vmatpush1.bf16.msra.mxu0 %v779_v29  ;;  %934 = vmatprep.subr.bf16.mxu1 %v829_v30 }
 0x175   : > { %v820_v32 = vpop.permute.xlu0 %819  ;;  %909 = vmatprep.subr.bf16.mxu0 %v782_v31 }
 0x176   : > { %v828_v33 = vsel %vm825_vm11, %v820_v32, %v822_v28  ;;  %v773_v38 = vpop.permute.xlu1 %772 }
 0x177   : > { %935 = vmatpush1.bf16.msra.mxu1 %v828_v33  ;;  %v781_v47 = vsel %vm778_vm12, %v773_v38, %v775_v43 }
 0x178   : > { %910 = vmatpush1.bf16.msra.mxu0 %v781_v47 }
 0x17a   : > { %1348 = vmatmul.mubr.msk.bf16.vlgmr.msra.gmra.mrb[0].mxu1 %vm463_vm3, %v1445_v36 }
 0x17b   : > { %974 = vmatprep.mubr.bf16.mxu1 %v1541_v37  ;;  %912 = vmatmul.mubr.bf16.vlgmr.msra.gmra.mrb[0].mxu0 %v1442_v48 }
 0x17c   : > { %921 = vmatprep.mubr.bf16.mxu0 %v1446_v46  ;;  %v1057_v46 = vld [vmem:[%s1945_s5] sm:$0xff] }
 0x182   : > { %1349 = vmatmul.mubr.msk.bf16.gmra.mrb[4].mxu1 %vm463_vm3, %v1449_v49  ;;  %v1058_v49 = vld [vmem:[%s1945_s5 + $0x8] sm:$0x7f] }
 0x183   : > { %922 = vmatmul.mubr.bf16.gmra.mrb[4].mxu0 %v1448_v50  ;;  %1141 = vmatprep.mubr.f32.mxu1 %v1542_v51 }
 0x186   : > { %v997_v54 = vpop.permute.xlu0 %996 }
 0x187   : > { %v992_v52 = vpop.permute.xlu1 %991 }
 0x18a   : > { %v1002_v7 = vpop.permute.xlu0 %1001 }
 0x18b   : > { %v1024_v53 = vpop.permute.xlu1 %1023 }
 0x18e   : > { %v1034_v17 = vpop.permute.xlu0 %1033 }
 0x18f   : > { %v1029_v55 = vpop.permute.xlu1 %1028 }
 0x192   : > { %v1064_v50 = vpop.permute.xlu0 %1063 }
 0x193   : > { %v1007_v35 = vpop.permute.xlu1 %1006 }
 0x197   : > { %v1039_v26 = vpop.permute.xlu1 %1038 }
 0x24d   : > { %v966_v37 = vpop.f32.mrb[0].mxu1 }
 0x24e   : > { %v968_v56 = vpop.f32.mrb[1].mxu1  ;;  %v913_v57 = vpop.f32.mrb[0].mxu0 }
 0x24f   : > { %v970_v45 = vpop.f32.mrb[2].mxu1  ;;  %v967_v58 = vadd.f32 %v966_v37, %v913_v57  ;;  %v915_v59 = vpop.f32.mrb[1].mxu0 }
 0x250   : > { %v972_v60 = vpop.f32.mrb[3].mxu1  ;;  %v969_v61 = vadd.f32 %v968_v56, %v915_v59  ;;  %v917_v63 = vpop.f32.mrb[2].mxu0 }
 0x251   : > { %v1009_v0 = vmul.f32 %v992_v52, %v967_v58  ;;  %v971_v1 = vadd.f32 %v970_v45, %v917_v63  ;;  %v919_v2 = vpop.f32.mrb[3].mxu0  ;;  %v1069_v56 = vpop.permute.xlu1 %1068 }
 0x252   : > { %v1010_v3 = vmul.f32 %v992_v52, %v969_v61  ;;  %v973_v4 = vadd.f32 %v972_v60, %v919_v2 }
 0x253   : > { %v1041_v5 = vadd.f32 %v1024_v53, %v1009_v0  ;;  %v1011_v6 = vmul.f32 %v997_v54, %v971_v1 }
 0x254   : > { %v1042_v8 = vadd.f32 %v1024_v53, %v1010_v3  ;;  %v1012_v9 = vmul.f32 %v997_v54, %v973_v4 }
 0x255   : > { %v976_v34 = vpop.f32.mrb[4].mxu1  ;;  %v1043_v62 = vadd.f32 %v1029_v55, %v1011_v6  ;;  %v1049_v12 = vmax.f32 %v1041_v5, 0.0 }
 0x256   : > { %v978_v10 = vpop.f32.mrb[5].mxu1  ;;  %v1044_v39 = vadd.f32 %v1029_v55, %v1012_v9  ;;  %v923_v11 = vpop.f32.mrb[4].mxu0  ;;  %v1050_v20 = vmax.f32 %v1042_v8, 0.0 }
 0x257   : > { %v980_v24 = vpop.f32.mrb[6].mxu1  ;;  %v1051_v13 = vmax.f32 %v1043_v62, 0.0  ;;  %v977_v14 = vadd.f32 %v976_v34, %v923_v11  ;;  %v925_v15 = vpop.f32.mrb[5].mxu0 }
 0x258   : > { %v982_v16 = vpop.f32.mrb[7].mxu1  ;;  %v1052_v21 = vmax.f32 %v1044_v39, 0.0  ;;  %v979_v40 = vadd.f32 %v978_v10, %v925_v15  ;;  %v927_v41 = vpop.f32.mrb[6].mxu0 }
 0x259   : > { %v1360_v42 = vpack.c.bf16 %v1051_v13, %v1049_v12  ;;  %v1013_v43 = vmul.f32 %v1002_v7, %v977_v14  ;;  %v981_v25 = vadd.f32 %v980_v24, %v927_v41  ;;  %v929_v27 = vpop.f32.mrb[7].mxu0 }
 0x25a   : > { %v1014_v18 = vmul.f32 %v1002_v7, %v979_v40  ;;  %v983_v44 = vadd.f32 %v982_v16, %v929_v27  ;;  %v1358_v19 = vpack.c.bf16 %v1052_v21, %v1050_v20 }
 0x25b   : > { %v1045_v22 = vadd.f32 %v1034_v17, %v1013_v43  ;;  %v1015_v23 = vmul.f32 %v1007_v35, %v981_v25 }
 0x25c   : > { %v1046_v28 = vadd.f32 %v1034_v17, %v1014_v18  ;;  %v1016_v29 = vmul.f32 %v1007_v35, %v983_v44  ;;  %1359 = vmatprep.subr.bf16.mxu1 %v1358_v19 }
 0x25d   : > { %v1047_v30 = vadd.f32 %v1039_v26, %v1015_v23  ;;  %1361 = vmatpush1.bf16.msra.mxu1 %v1360_v42  ;;  %v1053_v32 = vmax.f32 %v1045_v22, 0.0 }
 0x25e   : > { %v1048_v31 = vadd.f32 %v1039_v26, %v1016_v29  ;;  %v1054_v36 = vmax.f32 %v1046_v28, 0.0 }
 0x25f   : > { %v1055_v33 = vmax.f32 %v1047_v30, 0.0 }
 0x260   : > { %v1056_v38 = vmax.f32 %v1048_v31, 0.0 }
 0x261   : > { %v1364_v47 = vpack.c.bf16 %v1055_v33, %v1053_v32 }
 0x262   : > { %v1362_v48 = vpack.c.bf16 %v1056_v38, %v1054_v36 }
 0x264   : > { %1363 = vmatprep.subr.bf16.mxu1 %v1362_v48 }
 0x265   : > { %1365 = vmatpush1.bf16.msra.mxu1 %v1364_v47 }
 0x268   : > { %1350 = vmatmul.mubr.msk.f32.vlgmr.msra.gmra.mrb[8].mxu1 %vm463_vm3, %v1057_v46 }
 0x269   : > { %1147 = vmatprep.mubr.f32.mxu1 %v1542_v51 }
 0x26c   : > { %1351 = vmatmul.mubr.msk.f32.gmra.mrb[10].mxu1 %vm463_vm3, %v1058_v49 }
 0x33b   : > { %v1143_v52 = vpop.f32.mrb[8].mxu1 }
 0x33c   : > { %v1144_v53 = vadd.f32 %v1143_v52, %v1064_v50  ;;  %v1145_v54 = vpop.f32.mrb[9].mxu1 }
 0x33d   : > { %v1146_v37 = vadd.f32 %v1145_v54, %v1064_v50 }
 0x33e   : > { %v1352_v55 = vmul.f32 -1.442695, %v1144_v53  ;;  %v1176_v60 = vrot.slane %v1144_v53, 3 }
 0x33f   : > { %v1353_v57 = vmul.f32 -1.442695, %v1146_v37  ;;  %v1149_v51 = vpop.f32.mrb[10].mxu1  ;;  %v1179_v63 = vrot.slane %v1146_v37, 3 }
 0x340   : > { %1450 = vpow2.f32 %v1352_v55  ;;  %v1150_v45 = vadd.f32 %v1149_v51, %v1069_v56  ;;  %v1151_v58 = vpop.f32.mrb[11].mxu1 }
 0x341   : > { %1452 = vpow2.f32 %v1353_v57  ;;  %v1152_v59 = vadd.f32 %v1151_v58, %v1069_v56 }
 0x342   : > { %v1177_v61 = vrot.slane %v1150_v45, 3 }
 0x343   : > { %v1180_v0 = vrot.slane %v1152_v59, 3 }
 0x344   : > { %v1178_v1 = vsel %vm1175_vm13, %v1176_v60, %v1177_v61  ;;  %1188 = vst [vmem:[%s338_s21 + $0x10] sm:$0xf] %v1177_v61 }
 0x345   : > { %1186 = vst [vmem:[%s338_s21] sm:$0xff] %v1178_v1  ;;  %v1181_v2 = vsel %vm1175_vm13, %v1179_v63, %v1180_v0  ;;  %1189 = vst [vmem:[%s338_s21 + $0x18] sm:$0xf] %v1180_v0 }
 0x346   : > { %1187 = vst [vmem:[%s338_s21 + $0x8] sm:$0xff] %v1181_v2 }
 0x34a   : > { %v1451_v3 = vpop.eup %1450 }
 0x34b   : > { %v1453_v4 = vpop.eup %1452  ;;  %v1160_v5 = vadd.f32 1.0, %v1451_v3 }
 0x34c   : > { %v1161_v6 = vadd.f32 1.0, %v1453_v4 }
 0x34d   : > { %1454 = vrcp.f32 %v1160_v5 }
 0x34e   : > { %1456 = vrcp.f32 %v1161_v6 }
 0x357   : > { %v1455_v7 = vpop.eup %1454 }
 0x358   : > { %v1457_v8 = vpop.eup %1456 }
 0x359   : > { %v1168_v9 = vcombine.low %v1455_v7, %v1457_v8 }
 0x35b   : > { %1170 = vst [vmem:[%s333_s15] sm:$0x77] %v1168_v9 }
 0x35c PF: > { %p19_p8 = scmp.ge.s32.totalorder %s1610_s10, 4   ;;  %s1952_s27 = smov %s1514_s28 }
 0x35d   : > { %s1953_s28 = smov %s1518_s29  ;;  %s1954_s29 = smov %s1620_s13 }
 0x35e   : > { %s1955_s30 = smov %s1610_s10  ;;  %21 = sbr.rel (!%p19_p8) target bundleno = 3 (0x3), region = 100 }
 0x365   :  { %1227 = vsyncpa [#allocation3], 1 }
 0x366   :  { %1229 = vsyncpa [#allocation3 + $0x1], 1 }

</bundles_post_ra>
